<compile_context>
chip_gen: v6e
topology: v6e:2x2x1
jax: 0.10.0
libtpu: 0.0.40
codegen_flags: <defaults>
</compile_context>

<pallas_src>
import functools

import jax
import jax.numpy as jnp
from jax import lax
from jax.experimental import pallas as pl
from jax.experimental.pallas import tpu as pltpu

_NEG_BIG = float(jnp.finfo(jnp.float32).min)


def _lse_kernel(logits_ref, out_ref, m_acc, s_acc, *, c_total):
    """Per-row online logsumexp. Grid = (row_tiles, class_tiles); class axis innermost."""
    k = pl.program_id(1)
    nk = pl.num_programs(1)

    x = logits_ref[...].astype(jnp.float32)               # (TN, TC) f32 compute
    tn, tc = x.shape

    @pl.when(k == 0)
    def _init():
        m_acc[...] = jnp.full_like(m_acc, _NEG_BIG)
        s_acc[...] = jnp.zeros_like(s_acc)

    # Ragged-C masking: only emitted (statically) when block_c doesn't divide C.
    # Cost is 2 VPU ops/elem in that case; zero in the aligned case.
    if c_total % tc != 0:
        cls_ids = lax.broadcasted_iota(jnp.int32, (tn, tc), 1)  # tile-local
        limit = c_total - k * tc           # >= tc on all but the last class tile
        x = jnp.where(cls_ids < limit, x, _NEG_BIG)

    # --- online logsumexp update -------------------------------------------
    m_prev = m_acc[...]                                    # (TN, 1)
    m_new = jnp.maximum(m_prev, jnp.max(x, axis=-1, keepdims=True))
    alpha = jnp.exp(m_prev - m_new)                        # rescale old partial sum
    s_acc[...] = s_acc[...] * alpha + jnp.sum(jnp.exp(x - m_new),
                                              axis=-1, keepdims=True)
    m_acc[...] = m_new

    # --- finalize on the last class tile -------------------------------------
    @pl.when(k == nk - 1)
    def _finalize():
        out_ref[...] = m_acc[...] + jnp.log(s_acc[...])


def _round_up(x, m):
    return (x + m - 1) // m * m


def _vmem_budget_bytes():
    """~75% of physical VMEM (48 MiB on v7x, ~96 MiB on v5e/v6e); conservative fallback."""
    phys = 64 << 20                        # v7x per-TensorCore physical VMEM
    try:
        info = pltpu.get_tpu_info()
        cap = getattr(info, "vmem_capacity_bytes", None)
        if cap:
            phys = int(cap)
    except Exception:
        pass
    return (phys * 3) // 4


def nbs_loss(logits, target, w=None, reduction="mean",
             block_n=None, block_c=None):
    """Pallas implementation of NbsLoss.forward (CE base loss).

    NOTE: reduction='mean' divides by N (matches NbsLoss's `out.mean()`), NOT by
    the sum of weights like torch CrossEntropyLoss(weight=..., reduction='mean').
    """
    n, c = logits.shape
    itemsize = jnp.dtype(logits.dtype).itemsize
    sub = 16 if itemsize == 2 else 8       # sublane packing multiple

    # ---- tile selection ------------------------------------------------------
    if block_n is None:
        block_n = 512
    if block_c is None:
        block_c = 4096 if itemsize == 2 else 2048   # ~4 MiB input tile

    block_n = _round_up(min(block_n, _round_up(n, sub)), sub)
    block_c = _round_up(min(block_c, _round_up(c, 128)), 128)

    # v7x megacore: make sure the "parallel" row axis has >= 2 tiles.
    if n > sub and pl.cdiv(n, block_n) < 2:
        block_n = max(sub, _round_up(pl.cdiv(n, 2), sub))

    # ---- VMEM budget: 2x input tile (double buffer) + ~3x f32 intermediates ---
    budget = _vmem_budget_bytes()

    def _estimate(bc):
        return 2 * block_n * bc * itemsize + 3 * block_n * bc * 4 + (2 << 20)

    while _estimate(block_c) > budget and block_c > 128:
        block_c = max(128, (block_c // 2 // 128) * 128)

    grid = (pl.cdiv(n, block_n), pl.cdiv(c, block_c))

    # ---- streaming LSE kernel (no padded copy of logits is ever materialized) -
    lse = pl.pallas_call(
        functools.partial(_lse_kernel, c_total=c),
        out_shape=jax.ShapeDtypeStruct((n, 1), jnp.float32),
        grid_spec=pltpu.PrefetchScalarGridSpec(
            num_scalar_prefetch=0,
            grid=grid,
            in_specs=[
                pl.BlockSpec((block_n, block_c), lambda i, k: (i, k)),   # logits
            ],
            out_specs=pl.BlockSpec((block_n, 1), lambda i, k: (i, 0)),
            scratch_shapes=[pltpu.VMEM((block_n, 1), jnp.float32)] * 2,  # m, s
        ),
        compiler_params=pltpu.CompilerParams(
            dimension_semantics=("parallel", "arbitrary"),
            vmem_limit_bytes=int(budget),
        ),
    )(logits)[:, 0]                                         # (N,)

    # ---- tiny O(N) epilogue in plain JAX (gather + weight + reduction) --------
    picked = jnp.take_along_axis(
        logits, target[:, None].astype(jnp.int32), axis=-1)[:, 0].astype(jnp.float32)
    out = lse - picked
    if w is not None:
        out = out * w.astype(jnp.float32)

    if reduction == "mean":
        return jnp.sum(out) / n
    if reduction == "sum":
        return jnp.sum(out)
    return out


def _reference(logits, target, w=None, reduction="mean"):
    x = logits.astype(jnp.float32)
    lse = jax.nn.logsumexp(x, axis=-1)
    picked = jnp.take_along_axis(x, target[:, None].astype(jnp.int32), axis=-1)[:, 0]
    out = lse - picked
    if w is not None:
        out = out * w.astype(jnp.float32)
    if reduction == "mean":
        return out.mean()
    if reduction == "sum":
        return out.sum()
    return out


if __name__ == "__main__":
    key = jax.random.PRNGKey(0)
    k1, k2, k3 = jax.random.split(key, 3)

    # Small but non-trivial: ragged rows AND ragged classes, multi-tile grid
    # (2 "parallel" row tiles x 3 "arbitrary" class-reduction steps at 16x128).
    N, C = 24, 300
    logits = jax.random.normal(k1, (N, C), dtype=jnp.float32)
    target = jax.random.randint(k2, (N,), 0, C, dtype=jnp.int32)
    w = jax.random.uniform(k3, (N,), dtype=jnp.float32)

    for reduction in ("mean", "sum", "none"):
        got = nbs_loss(logits, target, w, reduction=reduction,
                       block_n=16, block_c=128)
        jax.block_until_ready(got)
        want = _reference(logits, target, w, reduction=reduction)
        assert jnp.allclose(got, want, rtol=1e-5, atol=1e-5), (reduction, got, want)

    # w=None path with default ('mean') reduction and default (auto) tile sizes.
    got = nbs_loss(logits, target, None, reduction="mean")
    jax.block_until_ready(got)
    want = _reference(logits, target, None, reduction="mean")
    assert jnp.allclose(got, want, rtol=1e-5, atol=1e-5), (got, want)

    # bf16 logits are ingested without a wrapper-side upcast (HBM traffic / 2).
    logits_bf16 = logits.astype(jnp.bfloat16)
    got = nbs_loss(logits_bf16, target, w, reduction="mean",
                   block_n=16, block_c=128)
    jax.block_until_ready(got)
    want = _reference(logits_bf16, target, w, reduction="mean")
    assert jnp.allclose(got, want, rtol=2e-3, atol=2e-3), (got, want)

    print("KERNEL_OK")
</pallas_src>

<mosaic_0001>
module attributes {stable_mosaic.version = 11 : i64} {
  func.func @_lse_kernel(%arg0: i32, %arg1: i32, %arg2: memref<16x128xf32, #tpu.memory_space<vmem>>, %arg3: memref<16x1xf32, #tpu.memory_space<vmem>>, %arg4: memref<16x1xf32, #tpu.memory_space<vmem>>, %arg5: memref<16x1xf32, #tpu.memory_space<vmem>>) attributes {dimension_semantics = [#tpu.dimension_semantics<parallel>, #tpu.dimension_semantics<arbitrary>], iteration_bounds = array<i64: 2, 3>, scalar_prefetch = 0 : i64, scratch_operands = 2 : i64, tpu.core_type = #tpu.core_type<tc>, window_params = [{transform_indices = @transform_0, window_bounds = array<i64: 16, 128>}, {transform_indices = @transform_1, window_bounds = array<i64: 16, 1>}]} {
    %c0 = arith.constant 0 : index
    %c0_0 = arith.constant 0 : index
    %0 = vector.load %arg2[%c0, %c0_0] : memref<16x128xf32, #tpu.memory_space<vmem>>, vector<16x128xf32>
    %c0_i32 = arith.constant 0 : i32
    %1 = arith.cmpi eq, %arg1, %c0_i32 : i32
    %2 = arith.extui %1 : i1 to i32
    %c0_i32_1 = arith.constant 0 : i32
    %3 = arith.cmpi ne, %2, %c0_i32_1 : i32
    scf.if %3 {
      %cst_13 = arith.constant -3.40282347E+38 : f32
      %30 = vector.broadcast %cst_13 : f32 to vector<16x1xf32>
      %c0_14 = arith.constant 0 : index
      %c0_15 = arith.constant 0 : index
      %31 = vector.load %arg4[%c0_14, %c0_15] : memref<16x1xf32, #tpu.memory_space<vmem>>, vector<16x1xf32>
      tpu.vector_store %arg4[%c0_14, %c0_15], %30 {strides = array<i32>} : memref<16x1xf32, #tpu.memory_space<vmem>>, vector<16x1xf32>,
      %cst_16 = arith.constant 0.000000e+00 : f32
      %32 = vector.broadcast %cst_16 : f32 to vector<16x1xf32>
      %c0_17 = arith.constant 0 : index
      %c0_18 = arith.constant 0 : index
      %33 = vector.load %arg5[%c0_17, %c0_18] : memref<16x1xf32, #tpu.memory_space<vmem>>, vector<16x1xf32>
      tpu.vector_store %arg5[%c0_17, %c0_18], %32 {strides = array<i32>} : memref<16x1xf32, #tpu.memory_space<vmem>>, vector<16x1xf32>,
    } else {
    }
    %4 = tpu.iota {dimensions = array<i32: 1>} : vector<16x128xi32>
    %c128_i32 = arith.constant 128 : i32
    %5 = arith.muli %arg1, %c128_i32 : i32
    %c300_i32 = arith.constant 300 : i32
    %6 = arith.subi %c300_i32, %5 : i32
    %7 = vector.broadcast %6 : i32 to vector<16x128xi32>
    %8 = arith.cmpi slt, %4, %7 : vector<16x128xi32>
    %cst = arith.constant -3.40282347E+38 : f32
    %9 = vector.broadcast %cst : f32 to vector<16x128xf32>
    %10 = arith.select %8, %0, %9 : vector<16x128xi1>, vector<16x128xf32>
    %c0_2 = arith.constant 0 : index
    %c0_3 = arith.constant 0 : index
    %11 = vector.load %arg4[%c0_2, %c0_3] : memref<16x1xf32, #tpu.memory_space<vmem>>, vector<16x1xf32>
    %cst_4 = arith.constant dense<0xFF800000> : vector<16xf32>
    %12 = vector.multi_reduction <maximumf>, %10, %cst_4 [1] : vector<16x128xf32> to vector<16xf32>
    %13 = vector.shape_cast %12 : vector<16xf32> to vector<16x1xf32>
    %14 = arith.maximumf %11, %13 : vector<16x1xf32>
    %15 = arith.subf %11, %14 : vector<16x1xf32>
    %16 = math.exp %15 : vector<16x1xf32>
    %c0_5 = arith.constant 0 : index
    %c0_6 = arith.constant 0 : index
    %17 = vector.load %arg5[%c0_5, %c0_6] : memref<16x1xf32, #tpu.memory_space<vmem>>, vector<16x1xf32>
    %18 = arith.mulf %17, %16 : vector<16x1xf32>
    %19 = vector.broadcast %14 : vector<16x1xf32> to vector<16x128xf32>
    %20 = arith.subf %10, %19 : vector<16x128xf32>
    %21 = math.exp %20 : vector<16x128xf32>
    %cst_7 = arith.constant dense<0.000000e+00> : vector<16xf32>
    %22 = vector.multi_reduction <add>, %21, %cst_7 [1] : vector<16x128xf32> to vector<16xf32>
    %23 = vector.shape_cast %22 : vector<16xf32> to vector<16x1xf32>
    %24 = arith.addf %18, %23 : vector<16x1xf32>
    %c0_8 = arith.constant 0 : index
    %c0_9 = arith.constant 0 : index
    %25 = vector.load %arg5[%c0_8, %c0_9] : memref<16x1xf32, #tpu.memory_space<vmem>>, vector<16x1xf32>
    tpu.vector_store %arg5[%c0_8, %c0_9], %24 {strides = array<i32>} : memref<16x1xf32, #tpu.memory_space<vmem>>, vector<16x1xf32>,
    %c0_10 = arith.constant 0 : index
    %c0_11 = arith.constant 0 : index
    %26 = vector.load %arg4[%c0_10, %c0_11] : memref<16x1xf32, #tpu.memory_space<vmem>>, vector<16x1xf32>
    tpu.vector_store %arg4[%c0_10, %c0_11], %14 {strides = array<i32>} : memref<16x1xf32, #tpu.memory_space<vmem>>, vector<16x1xf32>,
    %c2_i32 = arith.constant 2 : i32
    %27 = arith.cmpi eq, %arg1, %c2_i32 : i32
    %28 = arith.extui %27 : i1 to i32
    %c0_i32_12 = arith.constant 0 : i32
    %29 = arith.cmpi ne, %28, %c0_i32_12 : i32
    scf.if %29 {
      %c0_13 = arith.constant 0 : index
      %c0_14 = arith.constant 0 : index
      %30 = vector.load %arg4[%c0_13, %c0_14] : memref<16x1xf32, #tpu.memory_space<vmem>>, vector<16x1xf32>
      %c0_15 = arith.constant 0 : index
      %c0_16 = arith.constant 0 : index
      %31 = vector.load %arg5[%c0_15, %c0_16] : memref<16x1xf32, #tpu.memory_space<vmem>>, vector<16x1xf32>
      %32 = math.log %31 : vector<16x1xf32>
      %33 = arith.addf %30, %32 : vector<16x1xf32>
      %c0_17 = arith.constant 0 : index
      %c0_18 = arith.constant 0 : index
      %34 = vector.load %arg3[%c0_17, %c0_18] : memref<16x1xf32, #tpu.memory_space<vmem>>, vector<16x1xf32>
      tpu.vector_store %arg3[%c0_17, %c0_18], %33 {strides = array<i32>} : memref<16x1xf32, #tpu.memory_space<vmem>>, vector<16x1xf32>,
    } else {
    }
    return
  }
  func.func @transform_0(%arg0: i32, %arg1: i32) -> (i32, i32) {
    %c0_i32 = arith.constant 0 : i32
    return %arg0, %arg1 : i32, i32
  }
  func.func @transform_1(%arg0: i32, %arg1: i32) -> (i32, i32) {
    %c0_i32 = arith.constant 0 : i32
    %c0_i32_0 = arith.constant 0 : i32
    return %arg0, %c0_i32 : i32, i32
  }
}

</mosaic_0001>

<bundles_post_ra>
// kernel: tpu_custom_call.1
= control target key start
LH: loop header
LB: loop body
LE: loop exit
PB: predicated region body
PF: predicated region fallthrough
CT: control target
= control target key end

     0   :  { %6 = vsyncpa [#allocation5], 0  ;;  %s1091_s0 = inlined_call_operand.hbm [shape: f32[24,300], index: 0, kind: input, shape index: {}]   ;;  %s1092_s1 = inlined_call_operand.vmem [shape: f32[24,1], index: 1, kind: output, shape index: {}]  }
   0x1   :  { %8 = vsyncpa [#allocation5 + $0x1], 0  ;;  %s882_s6 = smov 0   ;;  %s884_s7 = smov 0  }
   0x2   :  { %s886_s8 = smov 0   ;;  %s888_s9 = smov 0  }
   0x3   :  { %s890_s10 = smov 0   ;;  %s892_s11 = smov 0  }
   0x4   :  { %s894_s12 = smov 0   ;;  %s896_s13 = smov 0  }
   0x5   :  { %s898_s14 = smov 0   ;;  %s900_s15 = smov 0  }
   0x6 LB: > { %s487_s16 = sadd.s32 4294967295, %s831_s15   ;;  %s23_s17 = sadd.s32 1, %s823_s13  ;;  %s831_s15 = sphi %s900_s15, %s14_s15   ;;  %s827_s14 = sphi %s898_s14, %s1104_s14   ;;  %s823_s13 = sphi %s896_s13, %s1103_s13   ;;  %s819_s12 = sphi %s894_s12, %s1102_s12   ;;  %s815_s11 = sphi %s892_s11, %s1101_s11   ;;  %s811_s10 = sphi %s890_s10, %s1100_s10   ;;  %s807_s9 = sphi %s888_s9, %s1099_s9   ;;  %s803_s8 = sphi %s886_s8, %s1098_s8   ;;  %s799_s7 = sphi %s884_s7, %s1097_s7   ;;  %s795_s6 = sphi %s882_s6, %s1096_s6  }
   0x7   : > { %p24_p0 = scmp.ge.s32.totalorder %s23_s17, 3  ;;  %s26_s18 = sadd.s32 1, %s827_s14 }
   0x8   : > { %s35_s19 = sadd.s32 1, %s811_s10  ;;  %p42_p1 = scmp.ne.s32.totalorder %s811_s10, %s807_s9 }
   0x9   : > { %s1106_s17 = smov (%p24_p0, %s23_s17), 0  ;;  %s1108_s18 = smov (!%p24_p0, %s26_s18), %s827_s14 }
   0xa   : > { %s31_s20 = ssub.s32 %s823_s13, %s1106_s17  ;;  %p43_p2 = scmp.eq.s32.totalorder %s831_s15, 0 }
   0xb   : > { %p28_p3 = scmp.ge.s32.totalorder %s1108_s18, 2  ;;  %p48_p4 = scmp.ne.s32.totalorder %s807_s9, %s803_s8 }
   0xc   : > { %p943_p5 = por %p43_p2, %p42_p1  ;;  %p49_p6 = scmp.eq.s32.totalorder %s487_s16, 0 }
   0xd   : > { %s1110_s18 = smov (%p28_p3, %s1108_s18), 0  ;;  %s61_s23 = sadd.s32 1, %s799_s7 }
   0xe   : > { %p949_p7 = por %p49_p6, %p48_p4  ;;  %s30_s24 = ssub.s32 %s827_s14, %s1110_s18 }
   0xf   : > { %p71_p8 = scmp.ne.s32.totalorder %s799_s7, %s795_s6  ;;  %s32_s25 = sor.u32 %s31_s20, %s30_s24 }
  0x10   : > { %p59_p9 = scmp.eq.s32.totalorder %s30_s24, 0  ;;  %p33_p10 = scmp.eq.s32.totalorder %s32_s25, 0 }
  0x11   : > { %p72_p11 = scmp.eq.s32.totalorder %s487_s16, 5  ;;  %p490_p13 = scmp.ge.s32.totalorder %s831_s15, 6 }
  0x12   : > { %s959_s26 = scalar_select %p59_p9, %s799_s7, %s61_s23  }
  0x13   : > { %s962_s27 = scalar_select %p33_p10, %s811_s10, %s35_s19  }
  0x14   : > { %p964_p12 = por %p72_p11, %p71_p8  ;;  %94 = sbr.rel (%p490_p13) target bundleno = 61 (0x3d), region = 16 }
  0x19   : > { %97 = sbr.rel (!%p943_p5) target bundleno = 61 (0x3d), region = 20  ;;  %s98_s29 = sand.u32 (%p943_p5), 1, %s811_s10  }
  0x1a   : > { %s492_s30 = sshll.u32 (%p943_p5), %s827_s14, 1  ;;  %s491_s2 = sshll.u32 (%p943_p5), %s98_s29, 4 }
  0x1b   : > { %s104_s3 = ssub.s32 (%p943_p5), 3, %s492_s30  ;;  %s976_s8 = scalar_lea.sflag (%p943_p5), [#allocation5], %s98_s29 }
  0x1c   : > { %p105_p0 = scmp.lt.s32.totalorder (%p943_p5), %s104_s3, 2  ;;  %s102_s16 = scalar_lea.vmem (%p943_p5), [#allocation4], %s491_s2 }
  0x1e   : > { %s1112_s3 = smov (!%p105_p0, %s104_s3), 2 }
  0x1f   : > { %s973_s4 = sshll.u32 %s1112_s3, 7 }
  0x20   : > { %s109_s5 = ssub.s32 256, %s973_s4 }
  0x21   : > { %110 = vsyncadd %s976_s8, %s109_s5  ;;  %p494_p1 = scmp.ne.s32.totalorder %s973_s4, 0  ;;  %s525_s19 = smul.u32 6, %s827_s14 }
  0x22   : > { %s117_s20 = sshll.u32 %s102_s16, 4  ;;  %s695_s5 = scalar_lea.hbm %s1091_s0, 1152  ;;  %s982_s20 = int_to_ptr.vmem [resolvable:$true] %s117_s20 }
  0x23   : > { %s113_s21 = sadd.s32 %s823_s13, %s525_s19 }
  0x24   : > { %s496_s23 = sshll.u32 %s113_s21, 7 }
  0x25   : > { %s987_s29 = scalar_lea.hbm %s1091_s0, %s496_s23 }
  0x26   : > { %s691_s30 = scalar_lea.hbm %s987_s29, %s973_s4 }
  0x27   : > { %p692_p2 = scmp.ne.s32.totalorder %s987_s29, %s691_s30  ;;  %p697_p5 = scmp.lt.s32.totalorder %s695_s5, %s691_s30 }
  0x29   : > { %p693_p3 = pnand %p692_p2, %p494_p1 }
  0x2b   : > { %p694_p4 = pneg %p693_p3 }
  0x2d   : > { %p699_p6 = pnand %p697_p5, %p694_p4 }
  0x2f   : > { %702 = shalt.err (!%p699_p6)
}
  0x30   : > { %s703_s16 = scalar_lea.vmem %s982_s20, %s973_s4  ;;  %s865_s19 = smov [#allocation4]  }
  0x31   : > { %p704_p8 = scmp.ne.s32.totalorder %s982_s20, %s703_s16  ;;  %s707_s21 = sshll.u32 %s865_s19, 4  ;;  %s708_s21 = int_to_ptr.vmem [resolvable:$false] %s707_s21 }
  0x32   : > { %s709_s23 = scalar_lea.vmem %s708_s21, 512  ;;  %p710_p11 = scmp.lt.s32.totalorder %s982_s20, %s708_s21 }
  0x33   : > { %p705_p9 = pnand %p704_p8, %p494_p1  ;;  %p711_p13 = scmp.lt.s32.totalorder %s709_s23, %s703_s16 }
  0x35   : > { %p706_p10 = pneg %p705_p9  ;;  %p712_p0 = por %p711_p13, %p710_p11 }
  0x37   : > { %p713_p2 = pnand %p712_p0, %p706_p10 }
  0x39   : > { %716 = shalt.err (!%p713_p2)
}
  0x3a   : > { %s866_s24 = smov 384   ;;  %s867_s25 = smov 128  }
  0x3b   : > { %s868_s30 = smov 8  }
  0x3c   : > { %123 = dma.hbm_to_vmem [thread:$0]  (%p494_p1), %s987_s29, %s973_s4, %s982_s20, %s976_s8, %s866_s24, %s867_s25, %s868_s30  }
  0x3d PF: > { %p499_p3 = scmp.ge.s32.totalorder %s831_s15, 1  ;;  %p125_p4 = scmp.lt.s32.totalorder %s831_s15, 7 }
  0x3f   : > { %p126_p5 = pnand %p499_p3, %p125_p4 }
  0x40   : > { %s131_s2 = sand.u32 (!%p126_p5), 1, %s807_s9  }
  0x41   : > { %129 = sbr.rel (%p126_p5) target bundleno = 584 (0x248), region = 24  ;;  %s500_s3 = sshll.u32 (!%p126_p5), %s131_s2, 4 }
  0x42   : > { %s132_s5 = scalar_lea.sflag (!%p126_p5), [#allocation5], %s131_s2  ;;  %s135_s16 = scalar_lea.vmem (!%p126_p5), [#allocation4], %s500_s3 }
  0x46   : > { %790 = dma.done.wait (%p949_p7), %s132_s5, 256  }
  0x47   : > { %792 = vsyncadd (%p949_p7), %s132_s5, 4294967040  ;;  %s150_s4 = sand.u32 1, %s795_s6   ;;  %v163_v0 = vld [vmem:[%s135_s16] sm:$0xff]  ;;  %v164_v1 = vld [vmem:[%s135_s16 + $0x8] sm:$0xff]  ;;  %p502_p1 = scmp.ne.s32.totalorder %s815_s11, 0 }
  0x48   : > { %s501_s8 = sshll.u32 %s150_s4, 4 }
  0x49   : > { %s1017_s20 = scalar_lea.vmem [#allocation6], %s501_s8   ;;  %168 = sbr.rel (%p502_p1) target bundleno = 81 (0x51), region = 32 }
  0x4e   : > { %vm169_vm0 = vcmask 7168   ;;  %v869_v2 = vmov -3.4028235e+38   ;;  %v870_v3 = vmov 0.0  }
  0x4f   : > { %170 = vst.msk [vmem:[#allocation2] sm:$0xff] %vm169_vm0, %v869_v2  ;;  %171 = vst.msk [vmem:[#allocation2 + $0x8] sm:$0xff] %vm169_vm0, %v869_v2 }
  0x50   : > { %172 = vst.msk [vmem:[#allocation3] sm:$0xff] %vm169_vm0, %v870_v3  ;;  %173 = vst.msk [vmem:[#allocation3 + $0x8] sm:$0xff] %vm169_vm0, %v870_v3 }
  0x51 PF: > { %v174_v4 = vlaneseq  ;;  %s503_s22 = sshll.u32 %s815_s11, 7  ;;  %v871_v9 = vmov 0   ;;  %vm222_vm2 = vcmask 7168   ;;  %p504_p7 = scmp.ne.s32.totalorder %s815_s11, 2 }
  0x52   : > { %s177_s6 = ssub.s32 300, %s503_s22  ;;  %677 = vset.pattern.permute.xlu1 %v871_v9  ;;  %678 = vset.pattern.permute.xlu0 %v871_v9 }
  0x53   : > { %v175_v5 = vand.u32 127, %v174_v4  ;;  %v178_v6 = vstv %s177_s6 }
  0x55   : > { %vm179_vm1 = vcmp.lt.s32.totalorder %v175_v5, %v178_v6 }
  0x56   : > { %v180_v7 = vsel %vm179_vm1, %v163_v0, -3.4028235e+38  ;;  %v181_v8 = vsel %vm179_vm1, %v164_v1, -3.4028235e+38  ;;  %v182_v10 = vld [vmem:[#allocation2] sm:$0xff]  ;;  %v183_v13 = vld [vmem:[#allocation2 + $0x8] sm:$0xff] }
  0x57   : > { %184 = vmax.xlane.f32.xlu0 %v180_v7  ;;  %v196_v29 = vld [vmem:[#allocation3] sm:$0xff]  ;;  %v197_v33 = vld [vmem:[#allocation3 + $0x8] sm:$0xff] }
  0x5b   : > { %186 = vmax.xlane.f32.xlu0 %v181_v8 }
  0xe0   : > { %v185_v11 = vpop.xlane.xlu0 %184 }
  0xe1   : > { %v188_v12 = vmax.f32 %v182_v10, %v185_v11 }
  0xe3   : > { %v190_v14 = vsub.f32 %v182_v10, %v188_v12  ;;  %225 = vst.msk [vmem:[#allocation2] sm:$0xff] %vm222_vm2, %v188_v12  ;;  %202 = vperm.xlu1 %677, %v188_v12  }
  0xe4   : > { %v187_v15 = vpop.xlane.xlu0 %186 }
  0xe5   : > { %v189_v16 = vmax.f32 %v183_v13, %v187_v15  ;;  %v192_v26 = vmul.f32 1.442695, %v190_v14 }
  0xe7   : > { %v191_v17 = vsub.f32 %v183_v13, %v189_v16  ;;  %226 = vst.msk [vmem:[#allocation2 + $0x8] sm:$0xff] %vm222_vm2, %v189_v16  ;;  %207 = vperm.xlu1 %677, %v189_v16  }
  0xe9   : > { %v194_v27 = vmul.f32 1.442695, %v191_v17 }
 0x15e   : > { %v203_v18 = vpop.permute.xlu1 %202 }
 0x15f   : > { %v210_v19 = vsub.f32 %v180_v7, %v203_v18 }
 0x161   : > { %v212_v20 = vmul.f32 1.442695, %v210_v19 }
 0x162   : > { %v208_v21 = vpop.permute.xlu1 %207 }
 0x163   : > { %679 = vpow2.f32 %v212_v20  ;;  %v211_v22 = vsub.f32 %v181_v8, %v208_v21 }
 0x165   : > { %v214_v23 = vmul.f32 1.442695, %v211_v22 }
 0x167   : > { %681 = vpow2.f32 %v214_v23 }
 0x168   : > { %683 = vpow2.f32 %v192_v26 }
 0x169   : > { %685 = vpow2.f32 %v194_v27 }
 0x170   : > { %v680_v24 = vpop.eup %679 }
 0x171   : > { %216 = vadd.xlane.f32.xlu0 %v680_v24 }
 0x174   : > { %v682_v25 = vpop.eup %681 }
 0x175   : > { %218 = vadd.xlane.f32.xlu1 %v682_v25  ;;  %v684_v28 = vpop.eup %683 }
 0x176   : > { %v198_v30 = vmul.f32 %v684_v28, %v196_v29  ;;  %v686_v31 = vpop.eup %685 }
 0x177   : > { %v199_v35 = vmul.f32 %v686_v31, %v197_v33 }
 0x1fa   : > { %v217_v32 = vpop.xlane.xlu0 %216 }
 0x1fb   : > { %v220_v34 = vadd.f32 %v217_v32, %v198_v30 }
 0x1fd   : > { %223 = vst.msk [vmem:[#allocation3] sm:$0xff] %vm222_vm2, %v220_v34  ;;  %230 = sbr.rel (%p504_p7) target bundleno = 540 (0x21c), region = 36 }
 0x1fe   : > { %v219_v36 = vpop.xlane.xlu1 %218 }
 0x1ff   : > { %v221_v37 = vadd.f32 %v219_v36, %v199_v35 }
 0x201   : > { %224 = vst.msk [vmem:[#allocation3 + $0x8] sm:$0xff] %vm222_vm2, %v221_v37 }
 0x202   : > { %v231_v41 = vld [vmem:[#allocation2] sm:$0xff]  ;;  %v232_v44 = vld [vmem:[#allocation2 + $0x8] sm:$0xff] }
 0x204   : > { %v233_v38 = vld [vmem:[#allocation3] sm:$0xff] }
 0x205   : > { %687 = vlog2.f32 %v233_v38 }
 0x208   : > { %v234_v39 = vld [vmem:[#allocation3 + $0x8] sm:$0xff] }
 0x209   : > { %689 = vlog2.f32 %v234_v39 }
 0x212   : > { %v688_v40 = vpop.eup %687 }
 0x213   : > { %v236_v43 = vmul.f32 0.6931472, %v688_v40 }
 0x215   : > { %v239_v46 = vadd.f32 %v236_v43, %v231_v41 }
 0x216   : > { %v690_v42 = vpop.eup %689 }
 0x217   : > { %v238_v45 = vmul.f32 0.6931472, %v690_v42  ;;  %241 = vst.msk [vmem:[%s1017_s20] sm:$0xff] %vm222_vm2, %v239_v46 }
 0x219   : > { %v240_v47 = vadd.f32 %v238_v45, %v232_v44 }
 0x21b   : > { %242 = vst.msk [vmem:[%s1017_s20 + $0x8] sm:$0xff] %vm222_vm2, %v240_v47 }
 0x21c PF: > { %249 = sbr.rel (!%p964_p12) target bundleno = 584 (0x248), region = 40  ;;  %s506_s11 = sshll.u32 (%p964_p12), %s819_s12, 1 }
 0x21d   : > { %s522_s29 = sshll.u32 (%p964_p12), %s819_s12, 4  ;;  %s251_s19 = ssub.s32 (%p964_p12), 3, %s506_s11 }
 0x21e   : > { %s1037_s24 = scalar_lea.vmem (%p964_p12), %s1092_s1, %s522_s29   ;;  %p252_p6 = scmp.lt.s32.totalorder (%p964_p12), %s251_s19, 2 }
 0x221   : > { %s1114_s19 = smov (!%p252_p6, %s251_s19), 2 }
 0x222   : > { %s507_s25 = sshll.u32 %s1114_s19, 7 }
 0x223   : > { %p510_p8 = scmp.eq.s32.totalorder %s507_s25, 0 }
 0x224   : > { %s1043_s28 = sshrl.u32 (!%p510_p8), %s1114_s19, 1 }
 0x225   : > { %260 = sbr.rel (%p510_p8) target bundleno = 584 (0x248), region = 44  ;;  %p511_p12 = scmp.le.s32.totalorder (!%p510_p8), %s1043_s28, 0 }
 0x22a   : > { %429 = sbr.rel (%p511_p12) target bundleno = 567 (0x237), region = 126  ;;  %s833_s12 = smov (!%p511_p12), %s1037_s24  }
 0x22b   : > { %s837_s30 = smov (!%p511_p12), %s1017_s20   ;;  %s841_s2 = smov (!%p511_p12), 0  }
 0x22c   : > { %s845_s3 = smov (!%p511_p12), 0  }
 0x22f LB: >> { %v325_v48 = vld [vmem:[%s839_s30] sm:$0xff]  ;;  %v327_v49 = vld [vmem:[%s839_s30 + $0x8] sm:$0xff]  ;;  %s329_s5 = sadd.s32 1, %s843_s2  ;;  %s319_s3 = sadd.s32 1, %s847_s3   ;;  %s847_s3 = sphi %s845_s3, %s319_s3   ;;  %s843_s2 = sphi %s841_s2, %s842_s2   ;;  %s839_s30 = sphi %s837_s30, %s334_s30   ;;  %s835_s12 = sphi %s833_s12, %s335_s12  }
 0x230   : >> { %326 = vst [vmem:[%s835_s12] sm:$0xff] %v325_v48  ;;  %328 = vst [vmem:[%s835_s12 + $0x8] sm:$0xff] %v327_v49  ;;  %p330_p9 = scmp.ge.s32.totalorder %s329_s5, %s1043_s28  ;;  %p318_p10 = scmp.ge.s32.totalorder %s319_s3, %s1043_s28 }
 0x232   : >> { %s1116_s5 = smov (%p330_p9, %s329_s5), 0  ;;  %321 = sbr.rel (!%p318_p10) target bundleno = 559 (0x22f), region = 132 }
 0x233   : >> { %s512_s16 = sshll.u32 %s1116_s5, 4  ;;  %s842_s2 = smov %s1116_s5  }
 0x234   : >> { %s334_s30 = scalar_lea.vmem %s1017_s20, %s512_s16 [#allocation6]   ;;  %s335_s12 = scalar_lea.vmem %s1037_s24, %s512_s16  }
 0x237 PF: > { %s1053_s4 = sand.u32 1, %s1114_s19   ;;  %s523_s8 = sshll.u32 %s1043_s28, 4 }
 0x238   : > { %s340_s22 = scalar_lea.vmem %s1017_s20, %s523_s8 [#allocation6]   ;;  %s342_s6 = scalar_lea.vmem %s1037_s24, %s523_s8  }
 0x239   : > { %p517_p11 = scmp.le.s32.totalorder %s1053_s4, 0 }
 0x23a   : > { %s849_s11 = smov (!%p517_p11), %s342_s6   ;;  %s853_s29 = smov (!%p517_p11), %s340_s22  }
 0x23b   : > { %443 = sbr.rel (%p517_p11) target bundleno = 584 (0x248), region = 137  ;;  %s857_s21 = smov (!%p517_p11), 0  }
 0x23c   : > { %s861_s23 = smov (!%p517_p11), 0  }
 0x240 LB: >> { %v352_v50 = vld [vmem:[%s855_s29] sm:$0xff]  ;;  %s354_s19 = sadd.s32 1, %s859_s21  ;;  %s346_s23 = sadd.s32 1, %s863_s23   ;;  %s863_s23 = sphi %s861_s23, %s346_s23   ;;  %s859_s21 = sphi %s857_s21, %s858_s21   ;;  %s855_s29 = sphi %s853_s29, %s359_s29   ;;  %s851_s11 = sphi %s849_s11, %s360_s11  }
 0x241   : >> { %353 = vst [vmem:[%s851_s11] sm:$0xff] %v352_v50  ;;  %p355_p13 = scmp.ge.s32.totalorder %s354_s19, %s1053_s4  ;;  %p345_p0 = scmp.ge.s32.totalorder %s346_s23, %s1053_s4 }
 0x243   : >> { %s1118_s19 = smov (%p355_p13, %s354_s19), 0  ;;  %348 = sbr.rel (!%p345_p0) target bundleno = 576 (0x240), region = 143 }
 0x244   : >> { %s518_s20 = sshll.u32 %s1118_s19, 3  ;;  %s858_s21 = smov %s1118_s19  }
 0x245   : >> { %s359_s29 = scalar_lea.vmem %s340_s22, %s518_s20 [#allocation6]   ;;  %s360_s11 = scalar_lea.vmem %s342_s6, %s518_s20  }
 0x248 PF: > { %s14_s15 = sadd.s32 1, %s831_s15   ;;  %s1096_s6 = smov %s799_s7 }
 0x249   : > { %p11_p2 = scmp.ge.s32.totalorder %s14_s15, 8   ;;  %s1097_s7 = smov %s959_s26 }
 0x24a   : > { %s1098_s8 = smov %s807_s9  ;;  %s1099_s9 = smov %s811_s10 }
 0x24b   : > { %s1100_s10 = smov %s962_s27  ;;  %s1101_s11 = smov %s823_s13 }
 0x24c   : > { %s1102_s12 = smov %s827_s14  ;;  %s1103_s13 = smov %s1106_s17 }
 0x24d   : > { %s1104_s14 = smov %s1110_s18  ;;  %13 = sbr.rel (!%p11_p2) target bundleno = 6 (0x6), region = 154 }
 0x252   :  { %376 = vsyncpa [#allocation5], 1 }
 0x253   :  { %378 = vsyncpa [#allocation5 + $0x1], 1 }

</bundles_post_ra>
